<compile_context>
chip_gen: v7x
topology: tpu7x:2x2x1
jax: 0.10.0
libtpu: 0.0.40
codegen_flags: <defaults>
</compile_context>

<pallas_src>
import jax
import jax.numpy as jnp
from jax.experimental import pallas as pl
from jax.experimental.pallas import tpu as pltpu


def _genprob_kernel(x_ref, state_ref, ctx_ref, w_ref, b_ref, o_ref):
    # x_ref:     (Bt, H)    VMEM, activation dtype (e.g. bf16)
    # state_ref: (Bt, 2H)   VMEM
    # ctx_ref:   (Bt, 2H)   VMEM
    # w_ref:     (3, 2H)    VMEM f32: row0 = wh, row1 = ws, row2 = [wx | 0]
    # b_ref:     (1, 1)     SMEM f32 (bias of wx)
    # o_ref:     (Bt, 1)    VMEM f32
    H = x_ref.shape[-1]
    ctx = ctx_ref[...].astype(jnp.float32)
    st = state_ref[...].astype(jnp.float32)
    x = x_ref[...].astype(jnp.float32)

    wh = w_ref[0:1, :]       # (1, 2H)
    ws = w_ref[1:2, :]       # (1, 2H)
    wx = w_ref[2:3, :H]      # (1, H)

    # Fuse the two 2H-wide terms into one elementwise pass, then one lane
    # reduction; the H-wide x term gets its own reduction.
    acc2h = ctx * wh + st * ws
    score = (
        jnp.sum(acc2h, axis=-1, keepdims=True)
        + jnp.sum(x * wx, axis=-1, keepdims=True)
        + b_ref[0, 0]
    )
    o_ref[...] = jax.nn.sigmoid(score)


def _lane_pad(n):
    return -(-n // 128) * 128


def _sublane_multiple(itemsize):
    # f32 -> 8 rows per vreg tile, bf16 -> 16, int8/fp8 -> 32.
    return 8 * max(1, 4 // max(1, itemsize))


def _target_tile_bytes():
    """Per-(Bt,2H)-stream tile target.

    Larger on v6e/v7x (higher HBM BW -> per-step time shrinks, so the ~0.35us
    fixed per-grid-step overhead must be amortized over bigger tiles);
    conservative 1 MiB elsewhere so v5e stays well inside its 16 MiB scoped
    VMEM default.
    """
    try:
        kind = jax.devices()[0].device_kind.lower()
    except Exception:
        return 1 << 20
    if ("v6" in kind) or ("v7" in kind) or ("7x" in kind):
        return 2 << 20
    return 1 << 20


def _pick_block_b(B, H, act_itemsize, target_tile_bytes):
    """Batch tile: dtype-aware sublane multiple, sized so the widest (Bt, 2H)
    activation tile is ~target_tile_bytes using lane-padded (honest) VMEM
    accounting."""
    sub = _sublane_multiple(act_itemsize)
    bytes_per_row = max(1, _lane_pad(2 * H) * act_itemsize)
    rows = target_tile_bytes // bytes_per_row
    rows = max(sub, (int(rows) // sub) * sub)
    rows = min(rows, 4096)
    if rows >= B:
        return B          # one full-batch block (full extent is always legal)
    return rows


def _vmem_bytes_estimate(block_b, H, act_itemsize):
    """Live VMEM with depth-2 buffering, lane-padded."""
    act = block_b * (_lane_pad(H) + 2 * _lane_pad(2 * H)) * act_itemsize
    out = block_b * _lane_pad(1) * 4
    wts = 8 * _lane_pad(2 * H) * 4
    return 2 * (act + out + wts)


def generation_probability(x, state, context, wx, ws, wh, bx, *, block_b=None):
    """p_gen = sigmoid(wh(context) + ws(state) + wx(x) + b); feature-last inputs."""
    B, H = x.shape
    assert state.shape == (B, 2 * H) and context.shape == (B, 2 * H)
    act_itemsize = jnp.dtype(x.dtype).itemsize

    if block_b is None:
        block_b = _pick_block_b(B, H, act_itemsize, _target_tile_bytes())
    else:
        # Round an explicit tile up to the dtype's sublane packing (16 rows for
        # bf16, 8 for f32) so packed row pairs are never split.
        sub = _sublane_multiple(act_itemsize)
        block_b = max(sub, -(-int(block_b) // sub) * sub)
        if block_b >= B:
            block_b = B

    grid = (pl.cdiv(B, block_b),)   # ragged last block: masked writes, no asserts

    # Fold the three tiny weight vectors into a single resident f32 block
    # (one DMA stream).  The bias stays a scalar in SMEM.
    # TODO(synk): for 2H < 128 (demo H=32) the activation streams are
    # lane-masked; a wrapper-side feature pad to a 128 multiple would make them
    # lane-dense at the cost of an extra HBM copy -- not worth it here.
    w_pack = jnp.zeros((3, 2 * H), jnp.float32)
    w_pack = w_pack.at[0, :].set(wh.reshape(-1).astype(jnp.float32))
    w_pack = w_pack.at[1, :].set(ws.reshape(-1).astype(jnp.float32))
    w_pack = w_pack.at[2, :H].set(wx.reshape(-1).astype(jnp.float32))
    b2 = bx.reshape(1, 1).astype(jnp.float32)

    est_vmem = _vmem_bytes_estimate(block_b, H, act_itemsize)
    vmem_limit = int(min(48 << 20, max(16 << 20, 2 * est_vmem)))

    cost = pl.CostEstimate(
        flops=10 * B * H,                 # 5H mul-adds per row
        transcendentals=B,                # one sigmoid per row
        bytes_accessed=B * 5 * H * act_itemsize + B * 4 + (6 * H + 1) * 4,
    )

    return pl.pallas_call(
        _genprob_kernel,
        out_shape=jax.ShapeDtypeStruct((B, 1), jnp.float32),
        grid_spec=pltpu.PrefetchScalarGridSpec(
            num_scalar_prefetch=0,
            grid=grid,
            in_specs=[
                pl.BlockSpec((block_b, H), lambda i: (i, 0)),
                pl.BlockSpec((block_b, 2 * H), lambda i: (i, 0)),
                pl.BlockSpec((block_b, 2 * H), lambda i: (i, 0)),
                pl.BlockSpec((3, 2 * H), lambda i: (0, 0)),
                pl.BlockSpec((1, 1), lambda i: (0, 0),
                             memory_space=pltpu.MemorySpace.SMEM),
            ],
            out_specs=pl.BlockSpec((block_b, 1), lambda i: (i, 0)),
        ),
        compiler_params=pltpu.CompilerParams(
            # Batch axis is fully independent -> megacore/2-TC sharding where
            # available (no-op on single-TC v5e/v6e).
            # TODO(synk): on v7x, confirm via xprof that both TensorCores are
            # busy; if not, switch this axis to pltpu.CORE_PARALLEL.
            dimension_semantics=(pltpu.PARALLEL,),
            vmem_limit_bytes=vmem_limit,
        ),
        cost_estimate=cost,
    )(x, state, context, w_pack, b2)


if __name__ == "__main__":
    B = 72   # deliberately not a multiple of block_b: exercises the cdiv grid
             # with a masked partial last block
    H = 32   # hidden_dim

    key = jax.random.PRNGKey(0)
    kx, ks, kc, kwx, kws, kwh, kb = jax.random.split(key, 7)

    # Activations in bf16 (recommended HBM dtype); kernel accumulates in f32.
    x = jax.random.normal(kx, (B, H), dtype=jnp.float32).astype(jnp.bfloat16)
    state = jax.random.normal(ks, (B, 2 * H), dtype=jnp.float32).astype(jnp.bfloat16)
    context = jax.random.normal(kc, (B, 2 * H), dtype=jnp.float32).astype(jnp.bfloat16)

    # Deterministic parameter init (mirrors nn.Linear uniform(-1/sqrt(fan_in), .))
    bound_h = 1.0 / jnp.sqrt(2.0 * H)
    bound_x = 1.0 / jnp.sqrt(1.0 * H)
    wh = jax.random.uniform(kwh, (1, 2 * H), minval=-bound_h, maxval=bound_h)
    ws = jax.random.uniform(kws, (1, 2 * H), minval=-bound_h, maxval=bound_h)
    wx = jax.random.uniform(kwx, (1, H), minval=-bound_x, maxval=bound_x)
    bx = jax.random.uniform(kb, (1,), minval=-bound_x, maxval=bound_x)

    # block_b=16 forces a 5-step ragged grid at this small demo scale so the
    # pipelined + masked-last-block path is exercised; at production sizes
    # block_b is auto-picked per generation (~1-2 MiB activation tiles).
    out = generation_probability(x, state, context, wx, ws, wh, bx, block_b=16)
    out = jax.block_until_ready(out)

    # Pure-JAX f32 reference of the PyTorch forward (elementwise sums so the
    # reference is not subject to TPU matmul default-precision downcasts).
    xf = x.astype(jnp.float32)
    sf = state.astype(jnp.float32)
    cf = context.astype(jnp.float32)
    ref = jax.nn.sigmoid(
        jnp.sum(cf * wh, axis=-1, keepdims=True)
        + jnp.sum(sf * ws, axis=-1, keepdims=True)
        + jnp.sum(xf * wx, axis=-1, keepdims=True)
        + bx
    )

    assert out.shape == (B, 1)
    err = float(jnp.max(jnp.abs(out - ref)))
    assert jnp.allclose(out, ref, atol=1e-5, rtol=1e-5), err

    print("KERNEL_OK")
</pallas_src>

<mosaic_0001>
module attributes {stable_mosaic.version = 11 : i64} {
  func.func @_genprob_kernel(%arg0: i32, %arg1: memref<16x32xbf16, #tpu.memory_space<vmem>>, %arg2: memref<16x64xbf16, #tpu.memory_space<vmem>>, %arg3: memref<16x64xbf16, #tpu.memory_space<vmem>>, %arg4: memref<3x64xf32, #tpu.memory_space<vmem>>, %arg5: memref<1x1xf32, #tpu.memory_space<smem>>, %arg6: memref<16x1xf32, #tpu.memory_space<vmem>>) attributes {dimension_semantics = [#tpu.dimension_semantics<parallel>], iteration_bounds = array<i64: 5>, scalar_prefetch = 0 : i64, scratch_operands = 0 : i64, tpu.core_type = #tpu.core_type<tc>, window_params = [{transform_indices = @transform_0, window_bounds = array<i64: 16, 32>}, {transform_indices = @transform_1, window_bounds = array<i64: 16, 64>}, {transform_indices = @transform_2, window_bounds = array<i64: 16, 64>}, {pipeline_mode = #tpu.pipeline_mode<synchronous>, transform_indices = @transform_3, window_bounds = array<i64: 3, 64>}, {transform_indices = @transform_4, window_bounds = array<i64: 1, 1>}, {transform_indices = @transform_5, window_bounds = array<i64: 16, 1>}]} {
    %c0 = arith.constant 0 : index
    %c0_0 = arith.constant 0 : index
    %0 = vector.load %arg3[%c0, %c0_0] : memref<16x64xbf16, #tpu.memory_space<vmem>>, vector<16x64xbf16>
    %1 = arith.extf %0 : vector<16x64xbf16> to vector<16x64xf32>
    %c0_1 = arith.constant 0 : index
    %c0_2 = arith.constant 0 : index
    %2 = vector.load %arg2[%c0_1, %c0_2] : memref<16x64xbf16, #tpu.memory_space<vmem>>, vector<16x64xbf16>
    %3 = arith.extf %2 : vector<16x64xbf16> to vector<16x64xf32>
    %c0_3 = arith.constant 0 : index
    %c0_4 = arith.constant 0 : index
    %4 = vector.load %arg1[%c0_3, %c0_4] : memref<16x32xbf16, #tpu.memory_space<vmem>>, vector<16x32xbf16>
    %5 = arith.extf %4 : vector<16x32xbf16> to vector<16x32xf32>
    %c0_5 = arith.constant 0 : index
    %c0_6 = arith.constant 0 : index
    %6 = vector.load %arg4[%c0_5, %c0_6] : memref<3x64xf32, #tpu.memory_space<vmem>>, vector<1x64xf32>
    %c1 = arith.constant 1 : index
    %c0_7 = arith.constant 0 : index
    %7 = vector.load %arg4[%c1, %c0_7] : memref<3x64xf32, #tpu.memory_space<vmem>>, vector<1x64xf32>
    %c2 = arith.constant 2 : index
    %c0_8 = arith.constant 0 : index
    %8 = vector.load %arg4[%c2, %c0_8] : memref<3x64xf32, #tpu.memory_space<vmem>>, vector<1x32xf32>
    %9 = vector.broadcast %6 : vector<1x64xf32> to vector<16x64xf32>
    %10 = arith.mulf %1, %9 : vector<16x64xf32>
    %11 = vector.broadcast %7 : vector<1x64xf32> to vector<16x64xf32>
    %12 = arith.mulf %3, %11 : vector<16x64xf32>
    %13 = arith.addf %10, %12 : vector<16x64xf32>
    %cst = arith.constant dense<0.000000e+00> : vector<16xf32>
    %14 = vector.multi_reduction <add>, %13, %cst [1] : vector<16x64xf32> to vector<16xf32>
    %15 = vector.shape_cast %14 : vector<16xf32> to vector<16x1xf32>
    %16 = vector.broadcast %8 : vector<1x32xf32> to vector<16x32xf32>
    %17 = arith.mulf %5, %16 : vector<16x32xf32>
    %cst_9 = arith.constant dense<0.000000e+00> : vector<16xf32>
    %18 = vector.multi_reduction <add>, %17, %cst_9 [1] : vector<16x32xf32> to vector<16xf32>
    %19 = vector.shape_cast %18 : vector<16xf32> to vector<16x1xf32>
    %20 = arith.addf %15, %19 : vector<16x1xf32>
    %c0_10 = arith.constant 0 : index
    %c0_11 = arith.constant 0 : index
    %21 = memref.load %arg5[%c0_10, %c0_11] : memref<1x1xf32, #tpu.memory_space<smem>>
    %22 = vector.broadcast %21 : f32 to vector<16x1xf32>
    %23 = arith.addf %20, %22 : vector<16x1xf32>
    %24 = arith.negf %23 : vector<16x1xf32>
    %25 = math.exp %24 : vector<16x1xf32>
    %cst_12 = arith.constant 1.000000e+00 : f32
    %26 = vector.broadcast %cst_12 : f32 to vector<16x1xf32>
    %27 = arith.addf %26, %25 : vector<16x1xf32>
    %28 = arith.divf %26, %27 : vector<16x1xf32>
    %c0_13 = arith.constant 0 : index
    %c0_14 = arith.constant 0 : index
    %29 = vector.load %arg6[%c0_13, %c0_14] : memref<16x1xf32, #tpu.memory_space<vmem>>, vector<16x1xf32>
    tpu.vector_store %arg6[%c0_13, %c0_14], %28 {strides = array<i32>} : memref<16x1xf32, #tpu.memory_space<vmem>>, vector<16x1xf32>,
    return
  }
  func.func @transform_0(%arg0: i32) -> (i32, i32) {
    %c0_i32 = arith.constant 0 : i32
    %c0_i32_0 = arith.constant 0 : i32
    return %arg0, %c0_i32 : i32, i32
  }
  func.func @transform_1(%arg0: i32) -> (i32, i32) {
    %c0_i32 = arith.constant 0 : i32
    %c0_i32_0 = arith.constant 0 : i32
    return %arg0, %c0_i32 : i32, i32
  }
  func.func @transform_2(%arg0: i32) -> (i32, i32) {
    %c0_i32 = arith.constant 0 : i32
    %c0_i32_0 = arith.constant 0 : i32
    return %arg0, %c0_i32 : i32, i32
  }
  func.func @transform_3(%arg0: i32) -> (i32, i32) {
    %c0_i32 = arith.constant 0 : i32
    %c0_i32_0 = arith.constant 0 : i32
    %c0_i32_1 = arith.constant 0 : i32
    return %c0_i32, %c0_i32_0 : i32, i32
  }
  func.func @transform_4(%arg0: i32) -> (i32, i32) {
    %c0_i32 = arith.constant 0 : i32
    %c0_i32_0 = arith.constant 0 : i32
    %c0_i32_1 = arith.constant 0 : i32
    return %c0_i32, %c0_i32_0 : i32, i32
  }
  func.func @transform_5(%arg0: i32) -> (i32, i32) {
    %c0_i32 = arith.constant 0 : i32
    %c0_i32_0 = arith.constant 0 : i32
    return %arg0, %c0_i32 : i32, i32
  }
}

</mosaic_0001>

<bundles_post_ra>
// kernel: tpu_custom_call.1
= control target key start
LH: loop header
LB: loop body
LE: loop exit
PB: predicated region body
PF: predicated region fallthrough
CT: control target
= control target key end

     0   :  { %s1007_s0 = inlined_call_operand.vmem [shape: bf16[72,32], index: 0, kind: input, shape index: {}]   ;;  %s1008_s1 = inlined_call_operand.vmem [shape: bf16[72,64], index: 1, kind: input, shape index: {}]   ;;  %s1009_s2 = inlined_call_operand.vmem [shape: bf16[72,64], index: 2, kind: input, shape index: {}]   ;;  %s1010_s3 = inlined_call_operand.vmem [shape: f32[3,64], index: 3, kind: input, shape index: {}]   ;;  %s1011_s4 = inlined_call_operand.<no memory space> [shape: f32[1,1], index: 4, kind: input, shape index: {}]   ;;  %s1012_s5 = inlined_call_operand.vmem [shape: f32[72,1], index: 5, kind: output, shape index: {}]  }
   0x1   :  { %10 = sst [smem:[#allocation2]] %s1011_s4 }
   0x2   :  { %s909_s20 = smov 0   ;;  %s911_s21 = smov 0  }
   0x3   :  { %s913_s22 = smov 0  }
   0x4 LB: > { %s922_s4 = sadd.s32 4294967295, %s842_s22   ;;  %s924_s23 = sadd.s32 1, %s842_s22   ;;  %s842_s22 = sphi %s913_s22, %s1016_s22   ;;  %s838_s21 = sphi %s911_s21, %s1015_s21   ;;  %s834_s20 = sphi %s909_s20, %s1014_s20  }
   0x5   : > { %s140_s24 = ssub.s32 %s842_s22, %s924_s23  ;;  %s143_s25 = sadd.s32 1, %s838_s21 }
   0x6   : > { %p141_p0 = scmp.eq.s32.totalorder %s140_s24, 0  ;;  %p153_p1 = scmp.ne.s32.totalorder %s838_s21, %s834_s20 }
   0x7   : > { %p154_p2 = scmp.eq.s32.totalorder %s922_s4, 4  ;;  %p647_p3 = scmp.ge.s32.totalorder %s842_s22, 1 }
   0x8   : > { %s932_s26 = scalar_select %p141_p0, %s838_s21, %s143_s25  }
   0x9   : > { %p934_p4 = por %p154_p2, %p153_p1  ;;  %p235_p5 = scmp.lt.s32.totalorder %s842_s22, 6 }
   0xb   : > { %p236_p6 = pnand %p647_p3, %p235_p5 }
   0xc   : > { %s939_s28 = sshll.u32 (!%p236_p6), %s922_s4, 1  ;;  %v655_v0 = vld [vmem:[%s1010_s3] ss:$0 sm:$0xff] (!%p236_p6)  ;;  %v656_v3 = vld [vmem:[%s1010_s3 + $0x1] ss:$0 sm:$0xff] (!%p236_p6)  ;;  %vm373_vm0 = vcmask (!%p236_p6), 261120  }
   0xd   : > { %239 = sbr.rel (%p236_p6) target bundleno = 259 (0x103), region = 40  ;;  %p289_p7 = scmp.lt.s32.totalorder (!%p236_p6), %s939_s28, 8  ;;  %v657_v7 = vld [vmem:[%s1010_s3 + $0x2] ss:$0 sm:$0xff] (!%p236_p6)  ;;  %vm360_vm1 = vcmask (!%p236_p6), 523264   ;;  %vm398_vm2 = vcmask (!%p236_p6), 7168  }
   0xe   : > { %s382_s24 = sld [smem:[#allocation2]] (!%p236_p6)  ;;  %s281_s25 = sand.u32 (!%p236_p6), 1, %s834_s20  }
  0x14   : > { %s290_s29 = scalar_select %p289_p7, %s939_s28, 8  ;;  %v383_v26 = vstv %s382_s24 }
  0x15   : > { %s409_s6 = ssub.s32 (%p934_p4), 9, %s939_s28  ;;  %s677_s7 = sshll.u32 (%p934_p4), %s922_s4, 4 }
  0x16   : > { %s650_s30 = sshll.u32 %s290_s29, 2  ;;  %s648_s29 = sshll.u32 %s281_s25, 4 }
  0x17   : > { %s306_s8 = scalar_lea.vmem %s1008_s1, %s650_s30  ;;  %s320_s11 = scalar_lea.vmem %s1009_s2, %s650_s30 }
  0x18   : > { %v681_v1 = vld [vmem:[%s320_s11] sm:$0xff]   ;;  %s292_s18 = scalar_lea.vmem %s1007_s0, %s650_s30  ;;  %s962_s30 = scalar_lea.vmem [#allocation3], %s648_s29  }
  0x19   : > { %v685_v2 = vld [vmem:[%s306_s8] sm:$0xff]   ;;  %v682_v4 = vunpack.c.l.bf16 %v681_v1  ;;  %v683_v8 = vunpack.c.h.bf16 %v681_v1  ;;  %p410_p8 = scmp.lt.s32.totalorder (%p934_p4), %s409_s6, 2  ;;  %s973_s9 = scalar_lea.vmem (%p934_p4), %s1012_s5, %s677_s7  }
  0x1a   : > { %v686_v5 = vunpack.c.l.bf16 %v685_v2  ;;  %v689_v6 = vld [vmem:[%s292_s18] sm:$0xff]   ;;  %v687_v9 = vunpack.c.h.bf16 %v685_v2 }
  0x1b   : > { %v690_v10 = vunpack.c.l.bf16 %v689_v6  ;;  %v691_v11 = vunpack.c.h.bf16 %v689_v6  ;;  %v350_v12 = vmul.f32 %v682_v4, %v655_v0  ;;  %v351_v14 = vmul.f32 %v683_v8, %v655_v0 }
  0x1c   : > { %v356_v13 = vmul.f32 %v686_v5, %v656_v3  ;;  %v357_v15 = vmul.f32 %v687_v9, %v656_v3 }
  0x1d   : > { %v371_v16 = vmul.f32 %v690_v10, %v657_v7  ;;  %v372_v17 = vmul.f32 %v691_v11, %v657_v7 }
  0x1e   : > { %v358_v18 = vadd.f32 %v356_v13, %v350_v12  ;;  %v359_v19 = vadd.f32 %v357_v15, %v351_v14 }
  0x1f   : > { %v374_v20 = vsel %vm373_vm0, %v371_v16, 0.0  ;;  %v377_v22 = vsel %vm373_vm0, %v372_v17, 0.0 }
  0x20   : > { %v361_v21 = vsel %vm360_vm1, %v358_v18, 0.0  ;;  %375 = vadd.xlane.f32.xlu1 %v374_v20  ;;  %v364_v23 = vsel %vm360_vm1, %v359_v19, 0.0 }
  0x21   : > { %362 = vadd.xlane.f32.xlu0 %v361_v21 }
  0x24   : > { %378 = vadd.xlane.f32.xlu1 %v377_v22 }
  0x25   : > { %365 = vadd.xlane.f32.xlu0 %v364_v23 }
  0xad   : > { %v376_v24 = vpop.xlane.xlu1 %375 }
  0xae   : > { %v363_v25 = vpop.xlane.xlu0 %362 }
  0xaf   : > { %v380_v27 = vadd.f32 %v376_v24, %v363_v25 }
  0xb1   : > { %v384_v28 = vadd.f32 %v383_v26, %v380_v27  ;;  %v379_v29 = vpop.xlane.xlu1 %378 }
  0xb2   : > { %v366_v30 = vpop.xlane.xlu0 %365 }
  0xb3   : > { %v658_v31 = vmul.f32 -1.442695, %v384_v28  ;;  %v381_v32 = vadd.f32 %v379_v29, %v366_v30 }
  0xb5   : > { %780 = vpow2.f32 %v658_v31  ;;  %v385_v33 = vadd.f32 %v383_v26, %v381_v32 }
  0xb7   : > { %v659_v34 = vmul.f32 -1.442695, %v385_v33 }
  0xb9   : > { %782 = vpow2.f32 %v659_v34 }
  0xbf   : > { %v781_v35 = vpop.eup %780 }
  0xc0   : > { %v392_v36 = vadd.f32 1.0, %v781_v35 }
  0xc2   : > { %784 = vrcp.f32 %v392_v36 }
  0xc3   : > { %v783_v37 = vpop.eup %782 }
  0xc4   : > { %v393_v38 = vadd.f32 1.0, %v783_v37 }
  0xc6   : > { %786 = vrcp.f32 %v393_v38 }
  0xcb   : > { %407 = sbr.rel (!%p934_p4) target bundleno = 259 (0x103), region = 44 }
  0xcc   : > { %v785_v39 = vpop.eup %784 }
  0xcd   : > { %399 = vst.msk [vmem:[%s962_s30] sm:$0xff] %vm398_vm2, %v785_v39 }
  0xd0   : > { %v787_v40 = vpop.eup %786 }
  0xd1   : > { %400 = vst.msk [vmem:[%s962_s30 + $0x8] sm:$0xff] %vm398_vm2, %v787_v40 }
  0xd2   : > { %s1018_s6 = smov (!%p410_p8, %s409_s6), 2 }
  0xd3   : > { %s662_s10 = sshll.u32 %s1018_s6, 7 }
  0xd4   : > { %p665_p9 = scmp.eq.s32.totalorder %s662_s10, 0 }
  0xd5   : > { %s979_s11 = sshrl.u32 (!%p665_p9), %s1018_s6, 1 }
  0xd6   : > { %418 = sbr.rel (%p665_p9) target bundleno = 259 (0x103), region = 48  ;;  %p666_p10 = scmp.le.s32.totalorder (!%p665_p9), %s979_s11, 0 }
  0xdd   : > { %588 = sbr.rel (%p666_p10) target bundleno = 238 (0xee), region = 130  ;;  %s844_s4 = smov (!%p666_p10), %s973_s9  }
  0xde   : > { %s848_s27 = smov (!%p666_p10), %s962_s30   ;;  %s852_s28 = smov (!%p666_p10), 0  }
  0xdf   : > { %s856_s12 = smov (!%p666_p10), 0  }
  0xe4 LB: >> { %v482_v41 = vld [vmem:[%s850_s27] sm:$0xff]  ;;  %v484_v42 = vld [vmem:[%s850_s27 + $0x8] sm:$0xff]  ;;  %s486_s13 = sadd.s32 1, %s854_s28  ;;  %s476_s12 = sadd.s32 1, %s858_s12   ;;  %s858_s12 = sphi %s856_s12, %s476_s12   ;;  %s854_s28 = sphi %s852_s28, %s853_s28   ;;  %s850_s27 = sphi %s848_s27, %s491_s27   ;;  %s846_s4 = sphi %s844_s4, %s492_s4  }
  0xe5   : >> { %483 = vst [vmem:[%s846_s4] sm:$0xff] %v482_v41  ;;  %485 = vst [vmem:[%s846_s4 + $0x8] sm:$0xff] %v484_v42  ;;  %p487_p11 = scmp.ge.s32.totalorder %s486_s13, %s979_s11  ;;  %p475_p12 = scmp.ge.s32.totalorder %s476_s12, %s979_s11 }
  0xe7   : >> { %s1020_s13 = smov (%p487_p11, %s486_s13), 0  ;;  %478 = sbr.rel (!%p475_p12) target bundleno = 228 (0xe4), region = 136 }
  0xe8   : >> { %s667_s14 = sshll.u32 %s1020_s13, 4  ;;  %s853_s28 = smov %s1020_s13  }
  0xe9   : >> { %s491_s27 = scalar_lea.vmem %s962_s30, %s667_s14 [#allocation3]   ;;  %s492_s4 = scalar_lea.vmem %s973_s9, %s667_s14  }
  0xee PF: > { %s989_s15 = sand.u32 1, %s1018_s6   ;;  %s678_s16 = sshll.u32 %s979_s11, 4 }
  0xef   : > { %s497_s17 = scalar_lea.vmem %s962_s30, %s678_s16 [#allocation3]   ;;  %s499_s18 = scalar_lea.vmem %s973_s9, %s678_s16  }
  0xf0   : > { %p672_p13 = scmp.le.s32.totalorder %s989_s15, 0 }
  0xf1   : > { %s860_s19 = smov (!%p672_p13), %s499_s18   ;;  %s864_s22 = smov (!%p672_p13), %s497_s17  }
  0xf2   : > { %602 = sbr.rel (%p672_p13) target bundleno = 259 (0x103), region = 141  ;;  %s868_s24 = smov (!%p672_p13), 0  }
  0xf3   : > { %s872_s25 = smov (!%p672_p13), 0  }
  0xf9 LB: >> { %v509_v43 = vld [vmem:[%s866_s22] sm:$0xff]  ;;  %s511_s29 = sadd.s32 1, %s870_s24  ;;  %s503_s25 = sadd.s32 1, %s874_s25   ;;  %s874_s25 = sphi %s872_s25, %s503_s25   ;;  %s870_s24 = sphi %s868_s24, %s869_s24   ;;  %s866_s22 = sphi %s864_s22, %s516_s22   ;;  %s862_s19 = sphi %s860_s19, %s517_s19  }
  0xfa   : >> { %510 = vst [vmem:[%s862_s19] sm:$0xff] %v509_v43  ;;  %p512_p0 = scmp.ge.s32.totalorder %s511_s29, %s989_s15  ;;  %p502_p1 = scmp.ge.s32.totalorder %s503_s25, %s989_s15 }
  0xfc   : >> { %s1022_s29 = smov (%p512_p0, %s511_s29), 0  ;;  %505 = sbr.rel (!%p502_p1) target bundleno = 249 (0xf9), region = 147 }
  0xfd   : >> { %s673_s30 = sshll.u32 %s1022_s29, 3  ;;  %s869_s24 = smov %s1022_s29  }
  0xfe   : >> { %s516_s22 = scalar_lea.vmem %s497_s17, %s673_s30 [#allocation3]   ;;  %s517_s19 = scalar_lea.vmem %s499_s18, %s673_s30  }
 0x103 PF: > { %p13_p2 = scmp.ge.s32.totalorder %s924_s23, 7   ;;  %s1014_s20 = smov %s838_s21 }
 0x104   : > { %s1015_s21 = smov %s932_s26  ;;  %s1016_s22 = smov %s924_s23 }
 0x105   :  { %15 = sbr.rel (!%p13_p2) target bundleno = 4 (0x4), region = 158 }

</bundles_post_ra>
